<compile_context>
chip_gen: v5e
topology: v5e:2x2
jax: 0.10.0
libtpu: 0.0.40
codegen_flags: <defaults>
</compile_context>

<pallas_src>
import functools

import jax
import jax.numpy as jnp
import numpy as np
from jax.experimental import pallas as pl
from jax.experimental.pallas import tpu as pltpu

# ---------------- problem sizes (small, consistent with the module) -------------
B = 2            # batch
SQ = 8           # anchor (query) sequence length
SK = 8           # augmented (key/value) sequence length
ANCHOR_DIM = 32  # anchor_hidden_dim == embed_dim (D)
AUG_DIM = 64     # aug_hidden_dim (DA)  -- must be >= ANCHOR_DIM for the packing below
NUM_HEADS = 4
HEAD_DIM = ANCHOR_DIM // NUM_HEADS
RMS_EPS = 1e-6


# ------------------------------- Pallas kernel ----------------------------------
def _cross_attn_kernel(
    x_ref,      # (B*SK + B*SQ, DA)  [aug ; zero-padded query], batch folded into sublanes
    w_ref,      # (DA, 4D)           packed weights: [W_kv_fused | Wq | Wo]
    b_ref,      # (2 + B*SQ, 4D)     row0: biases, row1: 1+rms_w, rows 2:: mask + row selectors
    out_ref,    # (B*SQ, D + SK)     lanes 0:D -> output_fin, lanes D:D+SK -> attn weights
    *,
    batch: int,
    sq: int,
    sk: int,
    num_heads: int,
    rms_eps: float,
):
    d = w_ref.shape[1] // 4
    nq = batch * sq
    nk = batch * sk
    hd = d // num_heads
    scale = 1.0 / float(np.sqrt(hd))

    x = x_ref[...]                        # (nk+nq, DA) f32
    w = w_ref[...]                        # (DA, 4D)    f32
    bz = b_ref[...]                       # (2+nq, 4D)  f32

    # --- one fused input-projection MXU push: [aug ; padded query] @ [Wkv | Wq | Wo]
    proj = jnp.dot(x.astype(jnp.bfloat16), w.astype(jnp.bfloat16),
                   preferred_element_type=jnp.float32)            # (nk+nq, 4D)

    kv = proj[0:nk, 0:2 * d] + bz[0:1, 0:2 * d]                   # (nk, 2D)
    k = kv[:, 0:d]                                                # (nk, D)
    v = kv[:, d:2 * d]                                            # (nk, D)
    q = proj[nk:nk + nq, 2 * d:3 * d] + bz[0:1, 2 * d:3 * d]      # (nq, D)
    query_resid = x[nk:nk + nq, 0:d]                              # f32, exact residual

    w_o = w[0:d, 3 * d:4 * d]                                     # (D, D)
    b_o = bz[0:1, 3 * d:4 * d]                                    # (1, D)
    rms_scale = bz[1:2, 0:d]                                      # (1, D) == 1 + rms_w
    neg = bz[2:2 + nq, 0:nk]                                      # (nq, nk) additive mask
    rowsel = bz[2:2 + nq, nk:nk + batch]                          # (nq, B)  one-hot batch id

    # hoisted transpose (one XLU transpose instead of one per head) + hoisted bf16 casts
    k_t = jnp.transpose(k)                                        # (D, nk) f32
    q_bf = q.astype(jnp.bfloat16)
    k_t_bf = k_t.astype(jnp.bfloat16)
    v_bf = v.astype(jnp.bfloat16)
    w_o_bf = w_o.astype(jnp.bfloat16)

    acc = jnp.zeros((nq, d), jnp.float32)                         # out-proj accumulator
    p_sum = jnp.zeros((nq, nk), jnp.float32)
    for h in range(num_heads):                                    # tiny static loop
        lo, hi = h * hd, (h + 1) * hd
        s = jnp.dot(q_bf[:, lo:hi], k_t_bf[lo:hi, :],
                    preferred_element_type=jnp.float32) * scale + neg        # (nq, nk)
        s = s - jnp.max(s, axis=-1, keepdims=True)
        e = jnp.exp(s)
        p = e / jnp.sum(e, axis=-1, keepdims=True)                # exact: weights are an output
        p_sum = p_sum + p
        head_out = jnp.dot(p.astype(jnp.bfloat16), v_bf[:, lo:hi],
                           preferred_element_type=jnp.float32)                # (nq, hd)
        acc = acc + jnp.dot(head_out.astype(jnp.bfloat16), w_o_bf[lo:hi, :],
                            preferred_element_type=jnp.float32)               # (nq, D)

    attn_out = acc + b_o

    # GemmaRMSNorm: x * rsqrt(mean(x^2) + eps) * (1 + weight)   [scale precomputed, f32]
    var = jnp.mean(attn_out * attn_out, axis=-1, keepdims=True)
    normed = attn_out * jax.lax.rsqrt(var + rms_eps) * rms_scale
    out_fin = normed + query_resid                                # (nq, D)

    # head-averaged attention weights; select each row's own batch diagonal block
    p_avg = p_sum * (1.0 / num_heads)
    attnw = jnp.zeros((nq, sk), jnp.float32)
    for bi in range(batch):
        attnw = attnw + rowsel[:, bi:bi + 1] * p_avg[:, bi * sk:(bi + 1) * sk]

    # single lane-packed store: [output_fin | attn_weights]
    out_ref[...] = jnp.concatenate([out_fin, attnw], axis=-1).astype(out_ref.dtype)


# ------------------------------- wrapper -----------------------------------------
def cross_attention_hook(query, aug_hidden, packed):
    """query: (B, SQ, D), aug_hidden: (B, SK, DA). Returns (output_fin, attn_weights)."""
    b, sq, d = query.shape
    _, sk, da = aug_hidden.shape
    nq, nk = b * sq, b * sk

    # Stack [aug ; zero-padded query] so a single MXU push covers both input projections.
    x_stacked = jnp.concatenate(
        [aug_hidden.reshape(nk, da),
         jnp.pad(query.reshape(nq, d), ((0, 0), (0, da - d)))],
        axis=0)                                                   # (nk+nq, DA)

    kernel = functools.partial(
        _cross_attn_kernel, batch=b, sq=sq, sk=sk,
        num_heads=NUM_HEADS, rms_eps=RMS_EPS)

    vmem = pl.BlockSpec(memory_space=pltpu.MemorySpace.VMEM)      # whole array, no grid
    packed_out = pl.pallas_call(
        kernel,
        out_shape=jax.ShapeDtypeStruct((nq, d + sk), jnp.float32),
        in_specs=[vmem, vmem, vmem],
        out_specs=vmem,
    )(x_stacked, packed["w_packed"], packed["b_packed"])

    out_fin = packed_out[:, 0:d].reshape(b, sq, d)
    attn_w = packed_out[:, d:d + sk].reshape(b, sq, sk)
    return out_fin, attn_w


# ----------------------- deterministic parameter init ----------------------------
def init_params(key):
    ks = jax.random.split(key, 11)
    u = lambda k, shape, s: (jax.random.uniform(k, shape, jnp.float32) * 2.0 - 1.0) * s
    d, da = ANCHOR_DIM, AUG_DIM
    return {
        # proj: Linear(aug_dim -> anchor_dim); stored already transposed (in, out)
        "w_proj_t": u(ks[0], (da, d), 1.0 / np.sqrt(da)),
        "b_proj":   u(ks[1], (1, d), 1.0 / np.sqrt(da)),
        # MHA packed in-proj (q, k, v), each (D, D) transposed to (in, out)
        "wq_t": u(ks[2], (d, d), 1.0 / np.sqrt(d)),
        "wk_t": u(ks[3], (d, d), 1.0 / np.sqrt(d)),
        "wv_t": u(ks[4], (d, d), 1.0 / np.sqrt(d)),
        "bq":   u(ks[5], (1, d), 0.1),
        "bk":   u(ks[6], (1, d), 0.1),
        "bv":   u(ks[7], (1, d), 0.1),
        # MHA out-proj
        "wo_t": u(ks[8], (d, d), 1.0 / np.sqrt(d)),
        "bo":   u(ks[9], (1, d), 1.0 / np.sqrt(d)),
        # GemmaRMSNorm weight (scale = 1 + w)
        "rms_w": u(ks[10], (1, d), 0.1),
    }


# -------------------- host-side (one-time) operand packing -----------------------
def pack_params(p):
    """Fuse the aug projection into K/V and pack weights/biases/masks into two slabs."""
    d, da = ANCHOR_DIM, AUG_DIM
    nq, nk = B * SQ, B * SK
    assert da >= d, "packing pads Wq/Wo rows up to AUG_DIM"
    assert 4 * d >= nk + B, "mask + row-selector columns must fit the bias slab width"

    w_kv_t = jnp.concatenate([p["wk_t"], p["wv_t"]], axis=1)                  # (D, 2D)
    w_kv_fused = p["w_proj_t"] @ w_kv_t                                       # (DA, 2D)
    b_kv_fused = p["b_proj"] @ w_kv_t + jnp.concatenate([p["bk"], p["bv"]], axis=1)
    row_pad = jnp.zeros((da - d, d), jnp.float32)
    w_packed = jnp.concatenate(
        [w_kv_fused,
         jnp.concatenate([p["wq_t"], row_pad], axis=0),
         jnp.concatenate([p["wo_t"], row_pad], axis=0)],
        axis=1)                                                               # (DA, 4D)

    b_row0 = jnp.concatenate([b_kv_fused, p["bq"], p["bo"]], axis=1)          # (1, 4D)
    b_row1 = jnp.concatenate(
        [1.0 + p["rms_w"], jnp.zeros((1, 3 * d), jnp.float32)], axis=1)       # (1, 4D)

    # rows 2:2+nq of the bias slab:
    #   cols 0:nk      -> additive block-diagonal cross-batch mask (0 / -1e30)
    #   cols nk:nk+B   -> one-hot "this row belongs to batch b" selectors
    mask_block = np.zeros((nq, 4 * d), np.float32)
    for i in range(nq):
        for j in range(nk):
            mask_block[i, j] = 0.0 if (i // SQ) == (j // SK) else -1e30
        mask_block[i, nk + i // SQ] = 1.0

    b_packed = jnp.concatenate([b_row0, b_row1, jnp.asarray(mask_block)], axis=0)
    return {"w_packed": w_packed, "b_packed": b_packed}          # (DA,4D), (2+nq, 4D)


# ----------------------------- pure-JAX references --------------------------------
def reference_fp32(query, aug_hidden, p):
    """Full-f32 mirror of the PyTorch module (no bf16 rounding anywhere)."""
    kv = aug_hidden @ p["w_proj_t"] + p["b_proj"]
    q = query @ p["wq_t"] + p["bq"]
    k = kv @ p["wk_t"] + p["bk"]
    v = kv @ p["wv_t"] + p["bv"]
    b, sq, d = q.shape
    sk = k.shape[1]
    qh = q.reshape(b, sq, NUM_HEADS, HEAD_DIM).transpose(0, 2, 1, 3)
    kh = k.reshape(b, sk, NUM_HEADS, HEAD_DIM).transpose(0, 2, 1, 3)
    vh = v.reshape(b, sk, NUM_HEADS, HEAD_DIM).transpose(0, 2, 1, 3)
    s = jnp.einsum("bhqd,bhkd->bhqk", qh, kh) / np.sqrt(HEAD_DIM)
    pw = jax.nn.softmax(s, axis=-1)
    o = jnp.einsum("bhqk,bhkd->bhqd", pw, vh).transpose(0, 2, 1, 3).reshape(b, sq, d)
    attn_out = o @ p["wo_t"] + p["bo"]
    attn_w = jnp.mean(pw, axis=1)
    var = jnp.mean(attn_out * attn_out, axis=-1, keepdims=True)
    normed = attn_out * jax.lax.rsqrt(var + RMS_EPS) * (1.0 + p["rms_w"])
    return normed + query, attn_w


def reference_matched(query, aug_hidden, packed):
    """Pure-JAX mirror of the kernel's math: same fused weights and the same bf16 MXU
    operand rounding points, f32 accumulation / softmax / RMSNorm."""
    w = packed["w_packed"]
    bz = packed["b_packed"]
    d, da = ANCHOR_DIM, AUG_DIM
    b, sq, _ = query.shape
    sk = aug_hidden.shape[1]
    bf = lambda t: t.astype(jnp.bfloat16)
    bdot = lambda a, c: jnp.dot(bf(a), bf(c), preferred_element_type=jnp.float32)

    aug2 = aug_hidden.reshape(b * sk, da)
    q2 = query.reshape(b * sq, d)
    kv = bdot(aug2, w[:, 0:2 * d]) + bz[0:1, 0:2 * d]
    q = bdot(q2, w[0:d, 2 * d:3 * d]) + bz[0:1, 2 * d:3 * d]
    kh = kv[:, 0:d].reshape(b, sk, NUM_HEADS, HEAD_DIM).transpose(0, 2, 1, 3)
    vh = kv[:, d:2 * d].reshape(b, sk, NUM_HEADS, HEAD_DIM).transpose(0, 2, 1, 3)
    qh = q.reshape(b, sq, NUM_HEADS, HEAD_DIM).transpose(0, 2, 1, 3)
    s = jnp.einsum("bhqd,bhkd->bhqk", bf(qh), bf(kh),
                   preferred_element_type=jnp.float32) * (1.0 / float(np.sqrt(HEAD_DIM)))
    pw = jax.nn.softmax(s, axis=-1)
    o = jnp.einsum("bhqk,bhkd->bhqd", bf(pw), bf(vh),
                   preferred_element_type=jnp.float32)
    o = o.transpose(0, 2, 1, 3).reshape(b, sq, d)
    attn_out = bdot(o, w[0:d, 3 * d:4 * d]) + bz[0:1, 3 * d:4 * d]
    attn_w = jnp.mean(pw, axis=1)
    var = jnp.mean(attn_out * attn_out, axis=-1, keepdims=True)
    normed = attn_out * jax.lax.rsqrt(var + RMS_EPS) * bz[1:2, 0:d]
    return normed + query, attn_w


# ------------------------------------ main ----------------------------------------
if __name__ == "__main__":
    key = jax.random.PRNGKey(0)
    kq, ka, kp = jax.random.split(key, 3)
    query = jax.random.normal(kq, (B, SQ, ANCHOR_DIM), jnp.float32)
    aug_hidden = jax.random.normal(ka, (B, SK, AUG_DIM), jnp.float32)
    raw_params = init_params(kp)
    packed_params = pack_params(raw_params)   # done once, off the hot path

    out_fin, attn_w = cross_attention_hook(query, aug_hidden, packed_params)
    out_fin = jax.block_until_ready(out_fin)
    attn_w = jax.block_until_ready(attn_w)

    # (1) structural check: pure-JAX mirror with identical bf16 MXU operand rounding.
    m_out, m_w = reference_matched(query, aug_hidden, packed_params)
    assert np.allclose(np.asarray(out_fin), np.asarray(m_out), rtol=2e-3, atol=2e-3)
    assert np.allclose(np.asarray(attn_w), np.asarray(m_w), rtol=2e-3, atol=2e-3)

    # (2) semantic check vs the full-f32 module reference; the loose tolerance bounds the
    #     bf16 MXU operand rounding (amplified ~1/rms(attn_out) by the RMSNorm).
    r_out, r_w = reference_fp32(query, aug_hidden, raw_params)
    assert np.allclose(np.asarray(out_fin), np.asarray(r_out), rtol=0.0, atol=0.1)
    assert np.allclose(np.asarray(attn_w), np.asarray(r_w), rtol=0.0, atol=0.01)

    print("KERNEL_OK")
</pallas_src>

<mosaic_0001>
module attributes {stable_mosaic.version = 11 : i64} {
  func.func @_cross_attn_kernel(%arg0: memref<32x64xf32, #tpu.memory_space<vmem>>, %arg1: memref<64x128xf32, #tpu.memory_space<vmem>>, %arg2: memref<18x128xf32, #tpu.memory_space<vmem>>, %arg3: memref<16x40xf32, #tpu.memory_space<vmem>>) attributes {dimension_semantics = [], scalar_prefetch = 0 : i64, scratch_operands = 0 : i64, tpu.core_type = #tpu.core_type<tc>} {
    %c0 = arith.constant 0 : index
    %c0_0 = arith.constant 0 : index
    %0 = vector.load %arg0[%c0, %c0_0] : memref<32x64xf32, #tpu.memory_space<vmem>>, vector<32x64xf32>
    %c0_1 = arith.constant 0 : index
    %c0_2 = arith.constant 0 : index
    %1 = vector.load %arg1[%c0_1, %c0_2] : memref<64x128xf32, #tpu.memory_space<vmem>>, vector<64x128xf32>
    %c0_3 = arith.constant 0 : index
    %c0_4 = arith.constant 0 : index
    %2 = vector.load %arg2[%c0_3, %c0_4] : memref<18x128xf32, #tpu.memory_space<vmem>>, vector<18x128xf32>
    %3 = arith.truncf %0 : vector<32x64xf32> to vector<32x64xbf16>
    %4 = arith.truncf %1 : vector<64x128xf32> to vector<64x128xbf16>
    %cst = arith.constant dense<0.000000e+00> : vector<32x128xf32>
    %5 = tpu.matmul %3, %4, %cst {dimension_numbers = #tpu.dot_dimension_numbers<[1], [0], [0], [1], [0, 0, 1, 1], [], []>} : vector<32x64xbf16>, vector<64x128xbf16>, vector<32x128xf32> -> vector<32x128xf32>
    %6 = vector.extract_strided_slice %5 {offsets = [0, 0], sizes = [16, 64], strides = [1, 1]} : vector<32x128xf32> to vector<16x64xf32>
    %7 = vector.extract_strided_slice %2 {offsets = [0, 0], sizes = [1, 64], strides = [1, 1]} : vector<18x128xf32> to vector<1x64xf32>
    %8 = vector.broadcast %7 : vector<1x64xf32> to vector<16x64xf32>
    %9 = arith.addf %6, %8 : vector<16x64xf32>
    %10 = vector.extract_strided_slice %9 {offsets = [0, 0], sizes = [16, 32], strides = [1, 1]} : vector<16x64xf32> to vector<16x32xf32>
    %11 = vector.extract_strided_slice %9 {offsets = [0, 32], sizes = [16, 32], strides = [1, 1]} : vector<16x64xf32> to vector<16x32xf32>
    %12 = vector.extract_strided_slice %5 {offsets = [16, 64], sizes = [16, 32], strides = [1, 1]} : vector<32x128xf32> to vector<16x32xf32>
    %13 = vector.extract_strided_slice %2 {offsets = [0, 64], sizes = [1, 32], strides = [1, 1]} : vector<18x128xf32> to vector<1x32xf32>
    %14 = vector.broadcast %13 : vector<1x32xf32> to vector<16x32xf32>
    %15 = arith.addf %12, %14 : vector<16x32xf32>
    %16 = vector.extract_strided_slice %0 {offsets = [16, 0], sizes = [16, 32], strides = [1, 1]} : vector<32x64xf32> to vector<16x32xf32>
    %17 = vector.extract_strided_slice %1 {offsets = [0, 96], sizes = [32, 32], strides = [1, 1]} : vector<64x128xf32> to vector<32x32xf32>
    %18 = vector.extract_strided_slice %2 {offsets = [0, 96], sizes = [1, 32], strides = [1, 1]} : vector<18x128xf32> to vector<1x32xf32>
    %19 = vector.extract_strided_slice %2 {offsets = [1, 0], sizes = [1, 32], strides = [1, 1]} : vector<18x128xf32> to vector<1x32xf32>
    %20 = vector.extract_strided_slice %2 {offsets = [2, 0], sizes = [16, 16], strides = [1, 1]} : vector<18x128xf32> to vector<16x16xf32>
    %21 = vector.extract_strided_slice %2 {offsets = [2, 16], sizes = [16, 2], strides = [1, 1]} : vector<18x128xf32> to vector<16x2xf32>
    %22 = tpu.transpose %10, [1, 0] : vector<16x32xf32> -> vector<32x16xf32>
    %23 = arith.truncf %15 : vector<16x32xf32> to vector<16x32xbf16>
    %24 = arith.truncf %22 : vector<32x16xf32> to vector<32x16xbf16>
    %25 = arith.truncf %11 : vector<16x32xf32> to vector<16x32xbf16>
    %26 = arith.truncf %17 : vector<32x32xf32> to vector<32x32xbf16>
    %cst_5 = arith.constant 0.000000e+00 : f32
    %27 = vector.broadcast %cst_5 : f32 to vector<16x32xf32>
    %cst_6 = arith.constant 0.000000e+00 : f32
    %28 = vector.broadcast %cst_6 : f32 to vector<16x16xf32>
    %29 = vector.extract_strided_slice %23 {offsets = [0, 0], sizes = [16, 8], strides = [1, 1]} : vector<16x32xbf16> to vector<16x8xbf16>
    %30 = vector.extract_strided_slice %24 {offsets = [0, 0], sizes = [8, 16], strides = [1, 1]} : vector<32x16xbf16> to vector<8x16xbf16>
    %cst_7 = arith.constant dense<0.000000e+00> : vector<16x16xf32>
    %31 = tpu.matmul %29, %30, %cst_7 {dimension_numbers = #tpu.dot_dimension_numbers<[1], [0], [0], [1], [0, 0, 1, 1], [], []>} : vector<16x8xbf16>, vector<8x16xbf16>, vector<16x16xf32> -> vector<16x16xf32>
    %cst_8 = arith.constant 0.353553385 : f32
    %32 = vector.broadcast %cst_8 : f32 to vector<16x16xf32>
    %33 = arith.mulf %31, %32 : vector<16x16xf32>
    %34 = arith.addf %33, %20 : vector<16x16xf32>
    %cst_9 = arith.constant dense<0xFF800000> : vector<16xf32>
    %35 = vector.multi_reduction <maximumf>, %34, %cst_9 [1] : vector<16x16xf32> to vector<16xf32>
    %36 = vector.shape_cast %35 : vector<16xf32> to vector<16x1xf32>
    %37 = vector.broadcast %36 : vector<16x1xf32> to vector<16x16xf32>
    %38 = arith.subf %34, %37 : vector<16x16xf32>
    %39 = math.exp %38 : vector<16x16xf32>
    %cst_10 = arith.constant dense<0.000000e+00> : vector<16xf32>
    %40 = vector.multi_reduction <add>, %39, %cst_10 [1] : vector<16x16xf32> to vector<16xf32>
    %41 = vector.shape_cast %40 : vector<16xf32> to vector<16x1xf32>
    %42 = vector.broadcast %41 : vector<16x1xf32> to vector<16x16xf32>
    %43 = arith.divf %39, %42 : vector<16x16xf32>
    %44 = arith.addf %28, %43 : vector<16x16xf32>
    %45 = arith.truncf %43 : vector<16x16xf32> to vector<16x16xbf16>
    %46 = vector.extract_strided_slice %25 {offsets = [0, 0], sizes = [16, 8], strides = [1, 1]} : vector<16x32xbf16> to vector<16x8xbf16>
    %cst_11 = arith.constant dense<0.000000e+00> : vector<16x8xf32>
    %47 = tpu.matmul %45, %46, %cst_11 {dimension_numbers = #tpu.dot_dimension_numbers<[1], [0], [0], [1], [0, 0, 1, 1], [], []>} : vector<16x16xbf16>, vector<16x8xbf16>, vector<16x8xf32> -> vector<16x8xf32>
    %48 = arith.truncf %47 : vector<16x8xf32> to vector<16x8xbf16>
    %49 = vector.extract_strided_slice %26 {offsets = [0, 0], sizes = [8, 32], strides = [1, 1]} : vector<32x32xbf16> to vector<8x32xbf16>
    %cst_12 = arith.constant dense<0.000000e+00> : vector<16x32xf32>
    %50 = tpu.matmul %48, %49, %cst_12 {dimension_numbers = #tpu.dot_dimension_numbers<[1], [0], [0], [1], [0, 0, 1, 1], [], []>} : vector<16x8xbf16>, vector<8x32xbf16>, vector<16x32xf32> -> vector<16x32xf32>
    %51 = arith.addf %27, %50 : vector<16x32xf32>
    %52 = vector.extract_strided_slice %23 {offsets = [0, 8], sizes = [16, 8], strides = [1, 1]} : vector<16x32xbf16> to vector<16x8xbf16>
    %53 = vector.extract_strided_slice %24 {offsets = [8, 0], sizes = [8, 16], strides = [1, 1]} : vector<32x16xbf16> to vector<8x16xbf16>
    %cst_13 = arith.constant dense<0.000000e+00> : vector<16x16xf32>
    %54 = tpu.matmul %52, %53, %cst_13 {dimension_numbers = #tpu.dot_dimension_numbers<[1], [0], [0], [1], [0, 0, 1, 1], [], []>} : vector<16x8xbf16>, vector<8x16xbf16>, vector<16x16xf32> -> vector<16x16xf32>
    %cst_14 = arith.constant 0.353553385 : f32
    %55 = vector.broadcast %cst_14 : f32 to vector<16x16xf32>
    %56 = arith.mulf %54, %55 : vector<16x16xf32>
    %57 = arith.addf %56, %20 : vector<16x16xf32>
    %cst_15 = arith.constant dense<0xFF800000> : vector<16xf32>
    %58 = vector.multi_reduction <maximumf>, %57, %cst_15 [1] : vector<16x16xf32> to vector<16xf32>
    %59 = vector.shape_cast %58 : vector<16xf32> to vector<16x1xf32>
    %60 = vector.broadcast %59 : vector<16x1xf32> to vector<16x16xf32>
    %61 = arith.subf %57, %60 : vector<16x16xf32>
    %62 = math.exp %61 : vector<16x16xf32>
    %cst_16 = arith.constant dense<0.000000e+00> : vector<16xf32>
    %63 = vector.multi_reduction <add>, %62, %cst_16 [1] : vector<16x16xf32> to vector<16xf32>
    %64 = vector.shape_cast %63 : vector<16xf32> to vector<16x1xf32>
    %65 = vector.broadcast %64 : vector<16x1xf32> to vector<16x16xf32>
    %66 = arith.divf %62, %65 : vector<16x16xf32>
    %67 = arith.addf %44, %66 : vector<16x16xf32>
    %68 = arith.truncf %66 : vector<16x16xf32> to vector<16x16xbf16>
    %69 = vector.extract_strided_slice %25 {offsets = [0, 8], sizes = [16, 8], strides = [1, 1]} : vector<16x32xbf16> to vector<16x8xbf16>
    %cst_17 = arith.constant dense<0.000000e+00> : vector<16x8xf32>
    %70 = tpu.matmul %68, %69, %cst_17 {dimension_numbers = #tpu.dot_dimension_numbers<[1], [0], [0], [1], [0, 0, 1, 1], [], []>} : vector<16x16xbf16>, vector<16x8xbf16>, vector<16x8xf32> -> vector<16x8xf32>
    %71 = arith.truncf %70 : vector<16x8xf32> to vector<16x8xbf16>
    %72 = vector.extract_strided_slice %26 {offsets = [8, 0], sizes = [8, 32], strides = [1, 1]} : vector<32x32xbf16> to vector<8x32xbf16>
    %cst_18 = arith.constant dense<0.000000e+00> : vector<16x32xf32>
    %73 = tpu.matmul %71, %72, %cst_18 {dimension_numbers = #tpu.dot_dimension_numbers<[1], [0], [0], [1], [0, 0, 1, 1], [], []>} : vector<16x8xbf16>, vector<8x32xbf16>, vector<16x32xf32> -> vector<16x32xf32>
    %74 = arith.addf %51, %73 : vector<16x32xf32>
    %75 = vector.extract_strided_slice %23 {offsets = [0, 16], sizes = [16, 8], strides = [1, 1]} : vector<16x32xbf16> to vector<16x8xbf16>
    %76 = vector.extract_strided_slice %24 {offsets = [16, 0], sizes = [8, 16], strides = [1, 1]} : vector<32x16xbf16> to vector<8x16xbf16>
    %cst_19 = arith.constant dense<0.000000e+00> : vector<16x16xf32>
    %77 = tpu.matmul %75, %76, %cst_19 {dimension_numbers = #tpu.dot_dimension_numbers<[1], [0], [0], [1], [0, 0, 1, 1], [], []>} : vector<16x8xbf16>, vector<8x16xbf16>, vector<16x16xf32> -> vector<16x16xf32>
    %cst_20 = arith.constant 0.353553385 : f32
    %78 = vector.broadcast %cst_20 : f32 to vector<16x16xf32>
    %79 = arith.mulf %77, %78 : vector<16x16xf32>
    %80 = arith.addf %79, %20 : vector<16x16xf32>
    %cst_21 = arith.constant dense<0xFF800000> : vector<16xf32>
    %81 = vector.multi_reduction <maximumf>, %80, %cst_21 [1] : vector<16x16xf32> to vector<16xf32>
    %82 = vector.shape_cast %81 : vector<16xf32> to vector<16x1xf32>
    %83 = vector.broadcast %82 : vector<16x1xf32> to vector<16x16xf32>
    %84 = arith.subf %80, %83 : vector<16x16xf32>
    %85 = math.exp %84 : vector<16x16xf32>
    %cst_22 = arith.constant dense<0.000000e+00> : vector<16xf32>
    %86 = vector.multi_reduction <add>, %85, %cst_22 [1] : vector<16x16xf32> to vector<16xf32>
    %87 = vector.shape_cast %86 : vector<16xf32> to vector<16x1xf32>
    %88 = vector.broadcast %87 : vector<16x1xf32> to vector<16x16xf32>
    %89 = arith.divf %85, %88 : vector<16x16xf32>
    %90 = arith.addf %67, %89 : vector<16x16xf32>
    %91 = arith.truncf %89 : vector<16x16xf32> to vector<16x16xbf16>
    %92 = vector.extract_strided_slice %25 {offsets = [0, 16], sizes = [16, 8], strides = [1, 1]} : vector<16x32xbf16> to vector<16x8xbf16>
    %cst_23 = arith.constant dense<0.000000e+00> : vector<16x8xf32>
    %93 = tpu.matmul %91, %92, %cst_23 {dimension_numbers = #tpu.dot_dimension_numbers<[1], [0], [0], [1], [0, 0, 1, 1], [], []>} : vector<16x16xbf16>, vector<16x8xbf16>, vector<16x8xf32> -> vector<16x8xf32>
    %94 = arith.truncf %93 : vector<16x8xf32> to vector<16x8xbf16>
    %95 = vector.extract_strided_slice %26 {offsets = [16, 0], sizes = [8, 32], strides = [1, 1]} : vector<32x32xbf16> to vector<8x32xbf16>
    %cst_24 = arith.constant dense<0.000000e+00> : vector<16x32xf32>
    %96 = tpu.matmul %94, %95, %cst_24 {dimension_numbers = #tpu.dot_dimension_numbers<[1], [0], [0], [1], [0, 0, 1, 1], [], []>} : vector<16x8xbf16>, vector<8x32xbf16>, vector<16x32xf32> -> vector<16x32xf32>
    %97 = arith.addf %74, %96 : vector<16x32xf32>
    %98 = vector.extract_strided_slice %23 {offsets = [0, 24], sizes = [16, 8], strides = [1, 1]} : vector<16x32xbf16> to vector<16x8xbf16>
    %99 = vector.extract_strided_slice %24 {offsets = [24, 0], sizes = [8, 16], strides = [1, 1]} : vector<32x16xbf16> to vector<8x16xbf16>
    %cst_25 = arith.constant dense<0.000000e+00> : vector<16x16xf32>
    %100 = tpu.matmul %98, %99, %cst_25 {dimension_numbers = #tpu.dot_dimension_numbers<[1], [0], [0], [1], [0, 0, 1, 1], [], []>} : vector<16x8xbf16>, vector<8x16xbf16>, vector<16x16xf32> -> vector<16x16xf32>
    %cst_26 = arith.constant 0.353553385 : f32
    %101 = vector.broadcast %cst_26 : f32 to vector<16x16xf32>
    %102 = arith.mulf %100, %101 : vector<16x16xf32>
    %103 = arith.addf %102, %20 : vector<16x16xf32>
    %cst_27 = arith.constant dense<0xFF800000> : vector<16xf32>
    %104 = vector.multi_reduction <maximumf>, %103, %cst_27 [1] : vector<16x16xf32> to vector<16xf32>
    %105 = vector.shape_cast %104 : vector<16xf32> to vector<16x1xf32>
    %106 = vector.broadcast %105 : vector<16x1xf32> to vector<16x16xf32>
    %107 = arith.subf %103, %106 : vector<16x16xf32>
    %108 = math.exp %107 : vector<16x16xf32>
    %cst_28 = arith.constant dense<0.000000e+00> : vector<16xf32>
    %109 = vector.multi_reduction <add>, %108, %cst_28 [1] : vector<16x16xf32> to vector<16xf32>
    %110 = vector.shape_cast %109 : vector<16xf32> to vector<16x1xf32>
    %111 = vector.broadcast %110 : vector<16x1xf32> to vector<16x16xf32>
    %112 = arith.divf %108, %111 : vector<16x16xf32>
    %113 = arith.addf %90, %112 : vector<16x16xf32>
    %114 = arith.truncf %112 : vector<16x16xf32> to vector<16x16xbf16>
    %115 = vector.extract_strided_slice %25 {offsets = [0, 24], sizes = [16, 8], strides = [1, 1]} : vector<16x32xbf16> to vector<16x8xbf16>
    %cst_29 = arith.constant dense<0.000000e+00> : vector<16x8xf32>
    %116 = tpu.matmul %114, %115, %cst_29 {dimension_numbers = #tpu.dot_dimension_numbers<[1], [0], [0], [1], [0, 0, 1, 1], [], []>} : vector<16x16xbf16>, vector<16x8xbf16>, vector<16x8xf32> -> vector<16x8xf32>
    %117 = arith.truncf %116 : vector<16x8xf32> to vector<16x8xbf16>
    %118 = vector.extract_strided_slice %26 {offsets = [24, 0], sizes = [8, 32], strides = [1, 1]} : vector<32x32xbf16> to vector<8x32xbf16>
    %cst_30 = arith.constant dense<0.000000e+00> : vector<16x32xf32>
    %119 = tpu.matmul %117, %118, %cst_30 {dimension_numbers = #tpu.dot_dimension_numbers<[1], [0], [0], [1], [0, 0, 1, 1], [], []>} : vector<16x8xbf16>, vector<8x32xbf16>, vector<16x32xf32> -> vector<16x32xf32>
    %120 = arith.addf %97, %119 : vector<16x32xf32>
    %121 = vector.broadcast %18 : vector<1x32xf32> to vector<16x32xf32>
    %122 = arith.addf %120, %121 : vector<16x32xf32>
    %123 = arith.mulf %122, %122 : vector<16x32xf32>
    %cst_31 = arith.constant dense<0.000000e+00> : vector<16xf32>
    %124 = vector.multi_reduction <add>, %123, %cst_31 [1] : vector<16x32xf32> to vector<16xf32>
    %125 = vector.shape_cast %124 : vector<16xf32> to vector<16x1xf32>
    %cst_32 = arith.constant 3.200000e+01 : f32
    %126 = vector.broadcast %cst_32 : f32 to vector<16x1xf32>
    %127 = arith.divf %125, %126 : vector<16x1xf32>
    %cst_33 = arith.constant 9.99999997E-7 : f32
    %128 = vector.broadcast %cst_33 : f32 to vector<16x1xf32>
    %129 = arith.addf %127, %128 : vector<16x1xf32>
    %130 = math.rsqrt %129 : vector<16x1xf32>
    %131 = vector.broadcast %130 : vector<16x1xf32> to vector<16x32xf32>
    %132 = arith.mulf %122, %131 : vector<16x32xf32>
    %133 = vector.broadcast %19 : vector<1x32xf32> to vector<16x32xf32>
    %134 = arith.mulf %132, %133 : vector<16x32xf32>
    %135 = arith.addf %134, %16 : vector<16x32xf32>
    %cst_34 = arith.constant 2.500000e-01 : f32
    %136 = vector.broadcast %cst_34 : f32 to vector<16x16xf32>
    %137 = arith.mulf %113, %136 : vector<16x16xf32>
    %cst_35 = arith.constant 0.000000e+00 : f32
    %138 = vector.broadcast %cst_35 : f32 to vector<16x8xf32>
    %139 = vector.extract_strided_slice %21 {offsets = [0, 0], sizes = [16, 1], strides = [1, 1]} : vector<16x2xf32> to vector<16x1xf32>
    %140 = vector.extract_strided_slice %137 {offsets = [0, 0], sizes = [16, 8], strides = [1, 1]} : vector<16x16xf32> to vector<16x8xf32>
    %141 = vector.broadcast %139 : vector<16x1xf32> to vector<16x8xf32>
    %142 = arith.mulf %141, %140 : vector<16x8xf32>
    %143 = arith.addf %138, %142 : vector<16x8xf32>
    %144 = vector.extract_strided_slice %21 {offsets = [0, 1], sizes = [16, 1], strides = [1, 1]} : vector<16x2xf32> to vector<16x1xf32>
    %145 = vector.extract_strided_slice %137 {offsets = [0, 8], sizes = [16, 8], strides = [1, 1]} : vector<16x16xf32> to vector<16x8xf32>
    %146 = vector.broadcast %144 : vector<16x1xf32> to vector<16x8xf32>
    %147 = arith.mulf %146, %145 : vector<16x8xf32>
    %148 = arith.addf %143, %147 : vector<16x8xf32>
    %149 = tpu.concatenate %135, %148 in 1 : vector<16x32xf32>, vector<16x8xf32> -> vector<16x40xf32>
    %c0_36 = arith.constant 0 : index
    %c0_37 = arith.constant 0 : index
    %150 = vector.load %arg3[%c0_36, %c0_37] : memref<16x40xf32, #tpu.memory_space<vmem>>, vector<16x40xf32>
    tpu.vector_store %arg3[%c0_36, %c0_37], %149 {strides = array<i32>} : memref<16x40xf32, #tpu.memory_space<vmem>>, vector<16x40xf32>,
    return
  }
}

</mosaic_0001>

<bundles_post_ra>
// kernel: tpu_custom_call.1
= control target key start
LH: loop header
LB: loop body
LE: loop exit
PB: predicated region body
PF: predicated region fallthrough
CT: control target
= control target key end

     0   :  { %8 = vsyncpa [#allocation3], 0  ;;  %s1267_s0 = inlined_call_operand.hbm [shape: f32[32,64], index: 0, kind: input, shape index: {}]   ;;  %s1268_s1 = inlined_call_operand.hbm [shape: f32[64,128], index: 1, kind: input, shape index: {}]   ;;  %s1269_s2 = inlined_call_operand.hbm [shape: f32[18,128], index: 2, kind: input, shape index: {}]   ;;  %s1270_s3 = inlined_call_operand.hbm [shape: f32[16,40], index: 3, kind: output, shape index: {}]  }
   0x1   :  { %9 = vsyncpa [#allocation6], 0 }
   0x2   :  { %10 = vsyncpa [#allocation4], 0  ;;  %s28_s14 = sshll.u32 %s1268_s1, 4  ;;  %s1006_s15 = smov [#allocation5]   ;;  %s29_s14 = int_to_ptr.hbm [resolvable:$true] %s28_s14 }
   0x3   :  { %s30_s16 = sshll.u32 %s1006_s15, 4  ;;  %s15_s19 = sshll.u32 %s1267_s0, 4  ;;  %s31_s16 = int_to_ptr.vmem [resolvable:$true] %s30_s16  ;;  %s16_s19 = int_to_ptr.hbm [resolvable:$true] %s15_s19 }
   0x4   :  { %s1007_s20 = smov 128   ;;  %s1008_s21 = smov 8  }
   0x5   :  { %36 = dma.hbm_to_vmem [thread:$0]  %s29_s14, 1024, %s31_s16, [#allocation6], %s1007_s20, %s1007_s20, %s1008_s21  }
   0x6   :  { %s1009_s22 = smov [#allocation2]   ;;  %s41_s1 = sshll.u32 %s1269_s2, 4  ;;  %s42_s1 = int_to_ptr.hbm [resolvable:$true] %s41_s1 }
   0x7   :  { %s17_s23 = sshll.u32 %s1009_s22, 4  ;;  %s1010_s0 = smov [#allocation7]   ;;  %s18_s23 = int_to_ptr.vmem [resolvable:$true] %s17_s23 }
   0x8   :  { %23 = dma.hbm_to_vmem [thread:$0]  %s16_s19, 512, %s18_s23, [#allocation3], %s1007_s20, %s1007_s20, %s1008_s21  }
   0x9   :  { %s43_s26 = sshll.u32 %s1010_s0, 4  ;;  %s44_s26 = int_to_ptr.vmem [resolvable:$true] %s43_s26 }
   0xa   :  { %49 = dma.hbm_to_vmem [thread:$0]  %s42_s1, 384, %s44_s26, [#allocation6], %s1007_s20, %s1007_s20, %s1008_s21  }
   0xb   :  { %1000 = dma.done.wait [#allocation3], 512  }
   0xc   :  { %1001 = vsyncadd [#allocation3], 4294966784 }
   0xd   :  { %1002 = dma.done.wait [#allocation6], 1408  }
   0xe   :  { %1003 = vsyncadd [#allocation6], 4294965888  ;;  %v73_v0 = vld [vmem:[#allocation5 + $0x30] sm:$0xff]  ;;  %v74_v1 = vld [vmem:[#allocation5 + $0x38] sm:$0xff]  ;;  %vm84_vm0 = vcmask 523264   ;;  %s1011_s2 = smov 88  }
   0xf   :  { %v71_v2 = vld [vmem:[#allocation5 + $0x20] sm:$0xff]  ;;  %v83_v3 = vpack.c.bf16 %v74_v1, %v73_v0  ;;  %v72_v4 = vld [vmem:[#allocation5 + $0x28] sm:$0xff]  ;;  %v1063_v6 = vld [vmem:[#allocation5 + $0x10] sm:$0xff]  ;;  %s1012_s27 = smov 56   ;;  %vm170_vm1 = vcmask 1043456   ;;  %vm166_vm2 = vcmask 64512  }
  0x10   :  { %v82_v5 = vpack.c.bf16 %v72_v4, %v71_v2  ;;  %v1065_v7 = vld [vmem:[#allocation5 + $0x18] sm:$0xff]  ;;  %v1069_v9 = vld [vmem:[#allocation5] sm:$0xff]  ;;  %v1071_v10 = vld [vmem:[#allocation5 + $0x8] sm:$0xff]  ;;  %vm193_vm3 = vcmask 1045504   ;;  %vm203_vm4 = vcmask 130048   ;;  %s1013_s28 = smov 64  }
  0x11   :  { %95 = vmatpush.bf16.msra.mxu0 %v83_v3  ;;  %v81_v8 = vpack.c.bf16 %v1065_v7, %v1063_v6  ;;  %v80_v11 = vpack.c.bf16 %v1071_v10, %v1069_v9  ;;  %v63_v12 = vld [vmem:[#allocation2] sm:$0xff]  ;;  %v64_v13 = vld [vmem:[#allocation2 + $0x8] sm:$0xff]  ;;  %v1075_v15 = vld [vmem:[#allocation2 + $0x10] sm:$0xff]  ;;  %s1014_s29 = smov 40   ;;  %s1015_s30 = smov 48  }
  0x12   :  { %v78_v14 = vpack.c.bf16 %v64_v13, %v63_v12  ;;  %v1077_v16 = vld [vmem:[#allocation2 + $0x18] sm:$0xff]  ;;  %v1081_v18 = vld [vmem:[#allocation7] sm:$0xff]  ;;  %v1099_v46 = vld [vmem:[#allocation7 + $0x8] sm:$0xff]  ;;  %s1016_s4 = smov 96   ;;  %s1017_s5 = smov 72  }
  0x13   :  { %v79_v17 = vpack.c.bf16 %v1077_v16, %v1075_v15  ;;  %v1084_v20 = vperm.slane %v1081_v18, 0  ;;  %v194_v47 = vrot.slane %v1081_v18, 2  ;;  %v195_v48 = vrot.slane %v1099_v46, 2  ;;  %v1106_v52 = vld [vmem:[#allocation7 + $0x10] sm:$0x3]  ;;  %s1018_s6 = smov 32  }
  0x14   :  { %v197_v54 = vrot.slane %v1106_v52, 2  ;;  %s1019_s7 = smov 80   ;;  %s1022_s8 = smov 120  }
  0x15   :  { %96 = vmatpush.bf16.msra.mxu0 %v82_v5  ;;  %v1104_v50 = vsel %vm193_vm3, %v194_v47, %v195_v48  ;;  %s1024_s9 = smov [#allocation8]   ;;  %s813_s13 = sshll.u32 %s1270_s3, 4  ;;  %s814_s13 = int_to_ptr.hbm [resolvable:$true] %s813_s13 }
  0x16   :  { %v1112_v57 = vsel %vm193_vm3, %v195_v48, %v197_v54  ;;  %s811_s10 = sshll.u32 %s1024_s9, 4  ;;  %s812_s10 = int_to_ptr.vmem [resolvable:$true] %s811_s10 }
  0x19   :  { %97 = vmatpush.bf16.msra.mxu0 %v81_v8 }
  0x1d   :  { %98 = vmatpush.bf16.msra.mxu0 %v80_v11 }
  0x20   :  { %827 = vmatmul.msk.bf16.vlgmr.msra.gmra.mxu0 %vm84_vm0, %v78_v14 }
  0x30   :  { %828 = vmatmul.msk.bf16.gmra.mxu0 %vm84_vm0, %v79_v17 }
  0x9d   :  { %v100_v19 = vpop.f32.mrf.mxu0 }
  0x9e   :  { %v111_v21 = vadd.f32 %v1084_v20, %v100_v19 }
  0xa0   :  { %v153_v23 = vpack.c.bf16 %v111_v21, %v111_v21 }
  0xa2   :  { %v257_v26 = vunpack.c.l.b16 %v153_v23 }
  0xa5   :  { %v102_v22 = vpop.f32.mrf.mxu0 }
  0xa6   :  { %v112_v24 = vadd.f32 %v1084_v20, %v102_v22 }
  0xa8   :  { %v154_v25 = vpack.c.bf16 %v112_v24, %v112_v24 }
  0xaa   :  { %v258_v27 = vunpack.c.l.b16 %v154_v25 }
  0xac   :  { %v1088_v28 = vpack.c.b16 %v258_v27, %v257_v26 }
  0xad   :  { %v105_v29 = vpop.f32.mrf.mxu0 }
  0xae   :  { %358 = vrot.lane.b32.xlu2 %v1088_v28, %s1011_s2  ;;  %v113_v30 = vadd.f32 %v1084_v20, %v105_v29 }
  0xb0   :  { %v147_v32 = vpack.c.bf16 %v113_v30, %v113_v30 }
  0xb2   :  { %v161_v35 = vunpack.c.l.b16 %v147_v32 }
  0xb5   :  { %v107_v31 = vpop.f32.mrf.mxu0 }
  0xb6   :  { %v114_v33 = vadd.f32 %v1084_v20, %v107_v31 }
  0xb8   :  { %v148_v34 = vpack.c.bf16 %v114_v33, %v114_v33 }
  0xba   :  { %v162_v36 = vunpack.c.l.b16 %v148_v34 }
  0xbc   :  { %v1093_v37 = vpack.c.b16 %v162_v36, %v161_v35 }
  0xbe   :  { %281 = vrot.lane.b32.xlu0 %v1093_v37, %s1012_s27 }
  0xe0   :  { %115 = vxpose.xlu0.b32.start [1/2] (short) (narrow) %v111_v21, 32 }
  0xe8   :  { %116 = vxpose.xlu0.b32.end [2/2] (short) (narrow) %v112_v24, 32 }
 0x108   :  { %v359_v42 = vpop.permute.xlu2 %358 }
 0x130   :  { %v282_v38 = vpop.permute.xlu0 %281 }
 0x184   :  { %v131_v39 = vpop.trf.xlu0 }
 0x185   :  { %v149_v40 = vpack.c.bf16 %v131_v39, %v131_v39 }
 0x187   :  { %v172_v41 = vsel %vm170_vm1, %v149_v40, 0 }
 0x188   :  { %181 = vmatpush.bf16.msra.mxu1 %v172_v41 }
 0x18c   :  { %371 = vmatpush.bf16.msrb.mxu1 %v359_v42  ;;  %v132_v43 = vpop.trf.xlu0 }
 0x18d   :  { %v150_v44 = vpack.c.bf16 %v132_v43, %v132_v43 }
 0x18f   :  { %v287_v45 = vsel %vm170_vm1, %v150_v44, 0 }
 0x190   :  { %296 = vmatpush.bf16.msra.mxu3 %v287_v45 }
 0x193   :  { %831 = vmatmul.msk.bf16.vlgmr.msra.gmra.mxu3 %vm166_vm2, %v282_v38 }
 0x194   :  { %v133_v61 = vpop.trf.xlu0 }
 0x195   :  { %v151_v17 = vpack.c.bf16 %v133_v61, %v133_v61 }
 0x197   :  { %v435_v19 = vsel %vm170_vm1, %v151_v17, 0 }
 0x19c   :  { %v134_v0 = vpop.trf.xlu0 }
 0x19d   :  { %v152_v1 = vpack.c.bf16 %v134_v0, %v134_v0 }
 0x19f   :  { %v560_v3 = vsel %vm170_vm1, %v152_v1, 0 }
 0x1a0   :  { %569 = vmatpush.bf16.msrb.mxu0 %v560_v3 }
 0x216   :  { %v298_v49 = vpop.f32.mrf.mxu3 }
 0x217   :  { %v303_v51 = vmul.f32 0.35355338, %v298_v49 }
 0x219   :  { %v305_v53 = vadd.f32 %v303_v51, %v1104_v50 }
 0x21b   :  { %v307_v55 = vsel %vm203_vm4, %v305_v53, -inf }
 0x21c   :  { %308 = vmax.xlane.f32.xlu1 %v307_v55 }
 0x21e   :  { %v300_v56 = vpop.f32.mrf.mxu3 }
 0x21f   :  { %v304_v58 = vmul.f32 0.35355338, %v300_v56 }
 0x221   :  { %v306_v59 = vadd.f32 %v304_v58, %v1112_v57 }
 0x223   :  { %v310_v60 = vsel %vm203_vm4, %v306_v59, -inf }
 0x224   :  { %311 = vmax.xlane.f32.xlu1 %v310_v60 }
 0x23d   :  { %164 = vrot.lane.b32.xlu1 %v1093_v37, %s1013_s28 }
 0x245   :  { %554 = vrot.lane.b32.xlu1 %v1093_v37, %s1014_s29 }
 0x28f   :  { %v309_v62 = vpop.xlane.xlu1 %308 }
 0x290   :  { %v313_v63 = vsub.f32 %v305_v53, %v309_v62 }
 0x292   :  { %v315_v2 = vmul.f32 1.442695, %v313_v63 }
 0x294   :  { %866 = vpow2.f32 %v315_v2 }
 0x297   :  { %v312_v4 = vpop.xlane.xlu1 %311 }
 0x298   :  { %v314_v5 = vsub.f32 %v306_v59, %v312_v4 }
 0x29a   :  { %v867_v8 = vpop.eup %866  ;;  %v317_v11 = vmul.f32 1.442695, %v314_v5 }
 0x29b   :  { %v319_v12 = vsel %vm203_vm4, %v867_v8, 0.0 }
 0x29c   :  { %868 = vpow2.f32 %v317_v11  ;;  %320 = vadd.xlane.f32.xlu2 %v319_v12 }
 0x2a2   :  { %v869_v13 = vpop.eup %868 }
 0x2a3   :  { %v322_v14 = vsel %vm203_vm4, %v869_v13, 0.0 }
 0x2a4   :  { %323 = vadd.xlane.f32.xlu2 %v322_v14 }
 0x2af   :  { %v165_v21 = vpop.permute.xlu1 %164 }
 0x2b0   :  { %829 = vmatmul.msk.bf16.vlgmr.msra.gmra.mxu1 %vm166_vm2, %v165_v21 }
 0x2b1   :  { %444 = vmatpush.bf16.msra.mxu1 %v435_v19 }
 0x2b7   :  { %v555_v22 = vpop.permute.xlu1 %554 }
 0x2b8   :  { %838 = vmatmul.msk.bf16.vlgmr.msrb.gmra.mxu0 %vm166_vm2, %v555_v22 }
 0x2bc   :  { %429 = vrot.lane.b32.xlu2 %v1093_v37, %s1015_s30 }
 0x30f   :  { %v321_v23 = vpop.xlane.xlu2 %320 }
 0x310   :  { %870 = vrcp.f32 %v321_v23  ;;  %v336_v33 = vand.u32 2147483648, %v321_v23  ;;  %vm330_vm6 = vweird.f32 %v321_v23  ;;  %v334_v34 = vand.u32 2147483647, %v321_v23 }
 0x312   :  { %v337_v40 = vor.u32 1.1754944e-38, %v336_v33  ;;  %vm335_vm9 = vcmp.eq.f32.partialorder %v334_v34, 8.507059e+37 }
 0x316   :  { %v871_v24 = vpop.eup %870 }
 0x317   :  { %v326_v25 = vmul.f32 %v871_v24, %v321_v23  ;;  %v324_v26 = vpop.xlane.xlu2 %323  ;;  %vm331_vm5 = vweird.f32 %v871_v24 }
 0x318   :  { %872 = vrcp.f32 %v324_v26  ;;  %vm332_vm7 = vmor %vm330_vm6, %vm331_vm5  ;;  %v351_v36 = vand.u32 2147483648, %v324_v26  ;;  %v349_v39 = vand.u32 2147483647, %v324_v26  ;;  %vm345_vm10 = vweird.f32 %v324_v26 }
 0x319   :  { %v327_v27 = vsub.f32 1.0, %v326_v25 }
 0x31a   :  { %v352_v42 = vor.u32 1.1754944e-38, %v351_v36  ;;  %vm350_vm12 = vcmp.eq.f32.partialorder %v349_v39, 8.507059e+37  ;;  %v156_v36 = vpack.c.bf16 %v1071_v10, %v1071_v10 }
 0x31b   :  { %v328_v29 = vmul.f32 %v871_v24, %v327_v27 }
 0x31d   :  { %v329_v31 = vadd.f32 %v871_v24, %v328_v29 }
 0x31e   :  { %v873_v30 = vpop.eup %872 }
 0x31f   :  { %v341_v32 = vmul.f32 %v873_v30, %v324_v26  ;;  %v333_v38 = vsel %vm332_vm7, %v871_v24, %v329_v31  ;;  %vm346_vm8 = vweird.f32 %v873_v30  ;;  %v430_v63 = vpop.permute.xlu2 %429 }
 0x320   :  { %vm347_vm11 = vmor %vm345_vm10, %vm346_vm8  ;;  %v338_v43 = vsel %vm335_vm9, %v337_v40, %v333_v38 }
 0x321   :  { %v342_v35 = vsub.f32 1.0, %v341_v32  ;;  %v1125_v47 = vmul.f32 %v867_v8, %v338_v43  ;;  %v158_v43 = vpack.c.bf16 %v1065_v7, %v1065_v7 }
 0x323   :  { %v343_v37 = vmul.f32 %v873_v30, %v342_v35 }
 0x325   :  { %v344_v41 = vadd.f32 %v873_v30, %v343_v37 }
 0x327   :  { %v348_v44 = vsel %vm347_vm11, %v873_v30, %v344_v41 }
 0x328   :  { %v353_v45 = vsel %vm350_vm12, %v352_v42, %v348_v44  ;;  %v157_v44 = vpack.c.bf16 %v1063_v6, %v1063_v6 }
 0x329   :  { %v1127_v48 = vmul.f32 %v869_v13, %v353_v45  ;;  %v653_v45 = vunpack.c.l.b16 %v158_v43 }
 0x32b   :  { %v357_v49 = vpack.c.bf16 %v1127_v48, %v1125_v47 }
 0x32d   :  { %v183_v51 = vpop.f32.mrf.mxu1  ;;  %832 = vmatmul.msk.bf16.vlgmr.msrb.gmra.mxu1 %vm203_vm4, %v357_v49 }
 0x32e   :  { %v188_v53 = vmul.f32 0.35355338, %v183_v51 }
 0x330   :  { %v201_v54 = vadd.f32 %v1104_v50, %v188_v53 }
 0x332   :  { %v204_v55 = vsel %vm203_vm4, %v201_v54, -inf }
 0x333   :  { %205 = vmax.xlane.f32.xlu2 %v204_v55 }
 0x335   :  { %v185_v56 = vpop.f32.mrf.mxu1  ;;  %v571_v58 = vpop.f32.mrf.mxu0 }
 0x336   :  { %v189_v59 = vmul.f32 0.35355338, %v185_v56  ;;  %v576_v61 = vmul.f32 0.35355338, %v571_v58  ;;  %v654_v56 = vpack.c.b16 %v653_v45, %v653_v45 }
 0x338   :  { %v202_v60 = vadd.f32 %v1112_v57, %v189_v59  ;;  %v578_v2 = vadd.f32 %v576_v61, %v1104_v50 }
 0x33a   :  { %v207_v62 = vsel %vm203_vm4, %v202_v60, -inf  ;;  %v580_v4 = vsel %vm203_vm4, %v578_v2, -inf }
 0x33b   :  { %208 = vmax.xlane.f32.xlu1 %v207_v62  ;;  %v1020_v62 = vmov 16  }
 0x33c   :  { %861 = vset.pattern.permute.xlu1 %v1020_v62  ;;  %862 = vset.pattern.permute.xlu0 %v1020_v62 }
 0x33d   :  { %835 = vmatmul.msk.bf16.vlgmr.msra.gmra.mxu1 %vm166_vm2, %v430_v63  ;;  %v573_v0 = vpop.f32.mrf.mxu0 }
 0x33e   :  { %v577_v1 = vmul.f32 0.35355338, %v573_v0 }
 0x340   :  { %v1139_v3 = vadd.f32 %v577_v1, %v1112_v57 }
 0x342   :  { %v583_v5 = vsel %vm203_vm4, %v1139_v3, -inf }
 0x343   :  { %581 = vmax.xlane.f32.xlu1 %v580_v4  ;;  %584 = vmax.xlane.f32.xlu2 %v583_v5 }
 0x3a6   :  { %v206_v8 = vpop.xlane.xlu2 %205 }
 0x3a7   :  { %v210_v11 = vsub.f32 %v201_v54, %v206_v8  ;;  %v528_v54 = vunpack.c.l.b16 %v157_v44 }
 0x3a9   :  { %v212_v12 = vmul.f32 1.442695, %v210_v11 }
 0x3aa   :  { %v1144_v13 = vpop.f32.mrf.mxu1 }
 0x3ab   :  { %874 = vpow2.f32 %v212_v12 }
 0x3ae   :  { %v209_v14 = vpop.xlane.xlu1 %208 }
 0x3af   :  { %v211_v17 = vsub.f32 %v202_v60, %v209_v14  ;;  %v529_v60 = vpack.c.b16 %v528_v54, %v528_v54 }
 0x3b1   :  { %v1146_v19 = vpop.eup %874  ;;  %v214_v21 = vmul.f32 1.442695, %v211_v17 }
 0x3b2   :  { %v1148_v22 = vpop.f32.mrf.mxu1  ;;  %v216_v23 = vsel %vm203_vm4, %v1146_v19, 0.0 }
 0x3b3   :  { %876 = vpow2.f32 %v214_v21  ;;  %v378_v24 = vpack.c.bf16 %v1148_v22, %v1144_v13  ;;  %217 = vadd.xlane.f32.xlu1 %v216_v23 }
 0x3b6   :  { %v585_v10 = vpop.xlane.xlu2 %584 }
 0x3b9   :  { %v1154_v25 = vpop.eup %876 }
 0x3ba   :  { %v446_v26 = vpop.f32.mrf.mxu1  ;;  %v219_v27 = vsel %vm203_vm4, %v1154_v25, 0.0 }
 0x3bb   :  { %v451_v29 = vmul.f32 0.35355338, %v446_v26  ;;  %220 = vadd.xlane.f32.xlu2 %v219_v27 }
 0x3bd   :  { %v453_v30 = vadd.f32 %v451_v29, %v1104_v50  ;;  %v380_v50 = vunpack.c.l.b16 %v156_v36 }
 0x3bf   :  { %v455_v31 = vsel %vm203_vm4, %v453_v30, -inf  ;;  %v381_v38 = vpack.c.b16 %v380_v50, %v380_v50 }
 0x3c0   :  { %456 = vmax.xlane.f32.xlu0 %v455_v31 }
 0x3c2   :  { %v448_v32 = vpop.f32.mrf.mxu1 }
 0x3c3   :  { %v452_v33 = vmul.f32 0.35355338, %v448_v32 }
 0x3c5   :  { %v1161_v34 = vadd.f32 %v452_v33, %v1112_v57  ;;  %v582_v57 = vpop.xlane.xlu1 %581 }
 0x3c6   :  { %v586_v37 = vsub.f32 %v578_v2, %v582_v57 }
 0x3c7   :  { %v458_v35 = vsel %vm203_vm4, %v1161_v34, -inf }
 0x3c8   :  { %459 = vmax.xlane.f32.xlu2 %v458_v35  ;;  %v588_v39 = vmul.f32 1.442695, %v586_v37 }
 0x3ca   :  { %878 = vpow2.f32 %v588_v39 }
 0x3cc   :  { %260 = vrot.lane.b32.xlu1 %v1088_v28, %s1016_s4 }
 0x3d0   :  { %v1170_v40 = vpop.eup %878 }
 0x3d1   :  { %v592_v41 = vsel %vm203_vm4, %v1170_v40, 0.0 }
 0x3d4   :  { %631 = vrot.lane.b32.xlu0 %v1088_v28, %s1017_s5 }
 0x3dc   :  { %530 = vrot.lane.b32.xlu0 %v529_v60, %s1018_s6 }
 0x3e0   :  { %382 = vrot.lane.b32.xlu2 %v381_v38, %s1018_s6 }
 0x3e4   :  { %680 = vrot.lane.b32.xlu0 %v1084_v20, %s1018_s6 }
 0x3ec   :  { %739 = vperm.xlu0 %862, %v1099_v46  }
 0x3f6   :  { %593 = vadd.xlane.f32.xlu1 %v592_v41 }
 0x40f   :  { %506 = vrot.lane.b32.xlu1 %v1088_v28, %s1019_s7 }
 0x417   :  { %655 = vrot.lane.b32.xlu1 %v654_v56, %s1018_s6 }
 0x41f   :  { %735 = vperm.xlu1 %861, %v1081_v18  }
 0x426   :  { %v218_v42 = vpop.xlane.xlu1 %217 }
 0x427   :  { %880 = vrcp.f32 %v218_v42  ;;  %v233_v0 = vand.u32 2147483648, %v218_v42  ;;  %vm227_vm14 = vweird.f32 %v218_v42  ;;  %v231_v1 = vand.u32 2147483647, %v218_v42  ;;  %743 = vperm.xlu1 %861, %v1106_v52  }
 0x429   :  { %v234_v14 = vor.u32 1.1754944e-38, %v233_v0  ;;  %vm232_vm5 = vcmp.eq.f32.partialorder %v231_v1, 8.507059e+37 }
 0x42d   :  { %v881_v49 = vpop.eup %880 }
 0x42e   :  { %v223_v51 = vmul.f32 %v881_v49, %v218_v42  ;;  %v221_v53 = vpop.xlane.xlu2 %220  ;;  %vm228_vm13 = vweird.f32 %v881_v49 }
 0x42f   :  { %882 = vrcp.f32 %v221_v53  ;;  %vm1181_vm15 = vmor %vm227_vm14, %vm228_vm13  ;;  %v248_v5 = vand.u32 2147483648, %v221_v53  ;;  %v246_v11 = vand.u32 2147483647, %v221_v53  ;;  %vm242_vm6 = vweird.f32 %v221_v53 }
 0x430   :  { %v224_v55 = vsub.f32 1.0, %v223_v51 }
 0x431   :  { %v249_v26 = vor.u32 1.1754944e-38, %v248_v5  ;;  %vm247_vm8 = vcmp.eq.f32.partialorder %v246_v11, 8.507059e+37 }
 0x432   :  { %v225_v58 = vmul.f32 %v881_v49, %v224_v55 }
 0x433   :  { %v457_v28 = vpop.xlane.xlu0 %456 }
 0x434   :  { %v461_v59 = vsub.f32 %v453_v30, %v457_v28  ;;  %v226_v7 = vadd.f32 %v881_v49, %v225_v58  ;;  %v587_v30 = vsub.f32 %v1139_v3, %v585_v10  ;;  %v155_v10 = vpack.c.bf16 %v1069_v9, %v1069_v9 }
 0x435   :  { %v883_v61 = vpop.eup %882 }
 0x436   :  { %v238_v6 = vmul.f32 %v883_v61, %v221_v53  ;;  %v463_v63 = vmul.f32 1.442695, %v461_v59  ;;  %vm243_vm0 = vweird.f32 %v883_v61  ;;  %v230_v12 = vsel %vm1181_vm15, %v881_v49, %v226_v7 }
 0x437   :  { %vm244_vm7 = vmor %vm242_vm6, %vm243_vm0  ;;  %v235_v27 = vsel %vm232_vm5, %v234_v14, %v230_v12  ;;  %v590_v3 = vmul.f32 1.442695, %v587_v30  ;;  %v405_v42 = vunpack.c.l.b16 %v155_v10  ;;  %v1021_v49 = vmov 17  }
 0x438   :  { %v239_v2 = vsub.f32 1.0, %v238_v6  ;;  %884 = vpow2.f32 %v463_v63  ;;  %863 = vset.pattern.permute.xlu2 %v1021_v49  ;;  %864 = vset.pattern.permute.xlu1 %v1021_v49 }
 0x439   :  { %v406_v43 = vpack.c.b16 %v405_v42, %v405_v42  ;;  %766 = vperm.xlu1 %864, %v1099_v46   ;;  %865 = vset.pattern.permute.xlu0 %v1021_v49 }
 0x43a   :  { %v240_v8 = vmul.f32 %v883_v61, %v239_v2 }
 0x43b   :  { %v460_v17 = vpop.xlane.xlu2 %459 }
 0x43c   :  { %v241_v21 = vadd.f32 %v883_v61, %v240_v8  ;;  %v462_v23 = vsub.f32 %v1161_v34, %v460_v17  ;;  %v1197_v34 = vmul.f32 %v1146_v19, %v235_v27 }
 0x43e   :  { %v1189_v29 = vpop.eup %884  ;;  %v465_v31 = vmul.f32 1.442695, %v462_v23  ;;  %v261_v32 = vpop.permute.xlu1 %260  ;;  %v245_v33 = vsel %vm244_vm7, %v883_v61, %v241_v21  ;;  %v355_v17 = vadd.f32 %v1125_v47, %v1197_v34 }
 0x43f   :  { %273 = vmatpush.bf16.msra.mxu2 %v261_v32  ;;  %v467_v35 = vsel %vm203_vm4, %v1189_v29, 0.0  ;;  %v250_v36 = vsel %vm247_vm8, %v249_v26, %v245_v33 }
 0x440   :  { %886 = vpow2.f32 %v465_v31  ;;  %468 = vadd.xlane.f32.xlu2 %v467_v35  ;;  %v1200_v50 = vmul.f32 %v1154_v25, %v250_v36 }
 0x441   :  { %888 = vpow2.f32 %v590_v3 }
 0x442   :  { %v254_v38 = vpack.c.bf16 %v1200_v50, %v1197_v34 }
 0x443   :  { %v383_v20 = vpop.permute.xlu2 %382 }
 0x444   :  { %830 = vmatmul.msk.bf16.vlgmr.msra.gmra.mxu2 %vm203_vm4, %v254_v38  ;;  %v388_v57 = vsel %vm170_vm1, %v383_v20, 0 }
 0x445   :  { %397 = vmatpush.bf16.msrb.mxu2 %v388_v57 }
 0x446   :  { %v1207_v37 = vpop.eup %886  ;;  %v632_v19 = vpop.permute.xlu0 %631 }
 0x447   :  { %644 = vmatpush.bf16.msrb.mxu1 %v632_v19  ;;  %v470_v25 = vsel %vm203_vm4, %v1207_v37, 0.0  ;;  %v1212_v39 = vpop.eup %888 }
 0x448   :  { %471 = vadd.xlane.f32.xlu2 %v470_v25  ;;  %v595_v41 = vsel %vm203_vm4, %v1212_v39, 0.0 }
 0x44e   :  { %v531_v3 = vpop.permute.xlu0 %530 }
 0x450   :  { %596 = vadd.xlane.f32.xlu2 %v595_v41 }
 0x454   :  { %833 = vmatmul.msk.bf16.vlgmr.msrb.gmra.mxu2 %vm166_vm2, %v378_v24 }
 0x468   :  { %407 = vrot.lane.b32.xlu2 %v406_v43, %s1018_s6 }
 0x469   :  { %v594_v44 = vpop.xlane.xlu1 %593 }
 0x46a   :  { %890 = vrcp.f32 %v594_v44  ;;  %v609_v46 = vand.u32 2147483648, %v594_v44  ;;  %vm603_vm11 = vweird.f32 %v594_v44  ;;  %v607_v62 = vand.u32 2147483647, %v594_v44 }
 0x46c   :  { %v610_v1 = vor.u32 1.1754944e-38, %v609_v46  ;;  %vm608_vm15 = vcmp.eq.f32.partialorder %v607_v62, 8.507059e+37 }
 0x470   :  { %762 = vperm.xlu2 %863, %v1081_v18   ;;  %v891_v13 = vpop.eup %890 }
 0x471   :  { %v599_v22 = vmul.f32 %v891_v13, %v594_v44  ;;  %vm604_vm9 = vweird.f32 %v891_v13 }
 0x472   :  { %vm1227_vm12 = vmor %vm603_vm11, %vm604_vm9 }
 0x473   :  { %v600_v53 = vsub.f32 1.0, %v599_v22 }
 0x475   :  { %v601_v55 = vmul.f32 %v891_v13, %v600_v53 }
 0x477   :  { %v602_v59 = vadd.f32 %v891_v13, %v601_v55 }
 0x478   :  { %770 = vperm.xlu2 %863, %v1106_v52  }
 0x479   :  { %v606_v0 = vsel %vm1227_vm12, %v891_v13, %v602_v59  ;;  %vm748_vm12 = vcmask 1041408  }
 0x47a   :  { %v611_v12 = vsel %vm608_vm15, %v610_v1, %v606_v0 }
 0x47b   :  { %v612_v31 = vmul.f32 %v1170_v40, %v611_v12 }
 0x481   :  { %v507_v45 = vpop.permute.xlu1 %506 }
 0x482   :  { %519 = vmatpush.bf16.msra.mxu2 %v507_v45 }
 0x489   :  { %v656_v9 = vpop.permute.xlu1 %655 }
 0x48a   :  { %v661_v51 = vsel %vm170_vm1, %v656_v9, 0 }
 0x48b   :  { %670 = vmatpush.bf16.msrb.mxu2 %v661_v51 }
 0x491   :  { %v736_v46 = vpop.permute.xlu1 %735 }
 0x4b3   :  { %v469_v24 = vpop.xlane.xlu2 %468 }
 0x4b4   :  { %892 = vrcp.f32 %v469_v24  ;;  %v484_v61 = vand.u32 2147483648, %v469_v24  ;;  %v482_v7 = vand.u32 2147483647, %v469_v24  ;;  %vm478_vm13 = vweird.f32 %v469_v24 }
 0x4b6   :  { %v485_v4 = vor.u32 1.1754944e-38, %v484_v61  ;;  %vm483_vm0 = vcmp.eq.f32.partialorder %v482_v7, 8.507059e+37  ;;  %v681_v61 = vpop.permute.xlu0 %680 }
 0x4ba   :  { %v893_v54 = vpop.eup %892 }
 0x4bb   :  { %v474_v56 = vmul.f32 %v893_v54, %v469_v24  ;;  %v472_v58 = vpop.xlane.xlu2 %471  ;;  %vm479_vm10 = vweird.f32 %v893_v54 }
 0x4bc   :  { %894 = vrcp.f32 %v472_v58  ;;  %vm480_vm14 = vmor %vm478_vm13, %vm479_vm10  ;;  %v499_v21 = vand.u32 2147483648, %v472_v58  ;;  %v497_v27 = vand.u32 2147483647, %v472_v58  ;;  %vm493_vm6 = vweird.f32 %v472_v58 }
 0x4bd   :  { %v475_v28 = vsub.f32 1.0, %v474_v56 }
 0x4be   :  { %v500_v36 = vor.u32 1.1754944e-38, %v499_v21  ;;  %vm498_vm8 = vcmp.eq.f32.partialorder %v497_v27, 8.507059e+37  ;;  %v740_v7 = vpop.permute.xlu0 %739 }
 0x4bf   :  { %v476_v60 = vmul.f32 %v893_v54, %v475_v28 }
 0x4c1   :  { %v477_v52 = vadd.f32 %v893_v54, %v476_v60 }
 0x4c2   :  { %v895_v63 = vpop.eup %894 }
 0x4c3   :  { %v481_v2 = vsel %vm480_vm14, %v893_v54, %v477_v52  ;;  %v489_v5 = vmul.f32 %v895_v63, %v472_v58  ;;  %v597_v8 = vpop.xlane.xlu2 %596  ;;  %vm494_vm5 = vweird.f32 %v895_v63 }
 0x4c4   :  { %896 = vrcp.f32 %v597_v8  ;;  %v486_v14 = vsel %vm483_vm0, %v485_v4, %v481_v2  ;;  %vm495_vm7 = vmor %vm493_vm6, %vm494_vm5  ;;  %v624_v10 = vand.u32 2147483648, %v597_v8  ;;  %v622_v44 = vand.u32 2147483647, %v597_v8 }
 0x4c5   :  { %v490_v11 = vsub.f32 1.0, %v489_v5  ;;  %v487_v23 = vmul.f32 %v1189_v29, %v486_v14  ;;  %v536_v29 = vsel %vm170_vm1, %v531_v3, 0  ;;  %vm618_vm10 = vweird.f32 %v597_v8 }
 0x4c6   :  { %v625_v24 = vor.u32 1.1754944e-38, %v624_v10  ;;  %vm623_vm11 = vcmp.eq.f32.partialorder %v622_v44, 8.507059e+37  ;;  %vm804_vm0 = vcmask 326656  }
 0x4c7   :  { %v491_v26 = vmul.f32 %v895_v63, %v490_v11  ;;  %v275_v30 = vpop.f32.mrf.mxu2  ;;  %v503_v32 = vadd.f32 %v487_v23, %v355_v17 }
 0x4c9   :  { %v492_v33 = vadd.f32 %v895_v63, %v491_v26  ;;  %v628_v38 = vadd.f32 %v612_v31, %v503_v32 }
 0x4ca   :  { %v897_v35 = vpop.eup %896 }
 0x4cb   :  { %v496_v20 = vsel %vm495_vm7, %v895_v63, %v492_v33  ;;  %v614_v47 = vmul.f32 %v897_v35, %v597_v8  ;;  %v408_v34 = vpop.permute.xlu2 %407  ;;  %v732_v19 = vmul.f32 0.25, %v628_v38  ;;  %vm619_vm9 = vweird.f32 %v897_v35 }
 0x4cc   :  { %v501_v57 = vsel %vm498_vm8, %v500_v36, %v496_v20  ;;  %v413_v25 = vsel %vm170_vm1, %v408_v34, 0  ;;  %vm620_vm1 = vmor %vm618_vm10, %vm619_vm9 }
 0x4cd   :  { %v502_v40 = vmul.f32 %v1207_v37, %v501_v57  ;;  %v615_v41 = vsub.f32 1.0, %v614_v47  ;;  %422 = vmatpush.bf16.msrb.mxu3 %v413_v25  ;;  %v749_v42 = vrot.slane %v732_v19, 6  ;;  %v356_v37 = vadd.f32 %v1127_v48, %v1200_v50  ;;  %v744_v48 = vpop.permute.xlu1 %743 }
 0x4cf   :  { %v616_v43 = vmul.f32 %v897_v35, %v615_v41  ;;  %v277_v45 = vpop.f32.mrf.mxu2  ;;  %v505_v49 = vpack.c.bf16 %v502_v40, %v487_v23  ;;  %773 = vrot.lane.b32.xlu0 %v749_v42, %s1022_s8  ;;  %v504_v54 = vadd.f32 %v502_v40, %v356_v37  ;;  %v755_v2 = vmul.f32 %v749_v42, %v736_v46 }
 0x4d0   :  { %v280_v13 = vpack.c.bf16 %v277_v45, %v275_v30 }
 0x4d1   :  { %545 = vmatpush.bf16.msra.mxu3 %v536_v29  ;;  %v617_v22 = vadd.f32 %v897_v35, %v616_v43  ;;  %836 = vmatmul.msk.bf16.vlgmr.msra.gmra.mxu2 %vm203_vm4, %v505_v49 }
 0x4d2   :  { %834 = vmatmul.msk.bf16.vlgmr.msrb.gmra.mxu3 %vm166_vm2, %v280_v13 }
 0x4d3   :  { %v621_v9 = vsel %vm620_vm1, %v897_v35, %v617_v22  ;;  %v763_v60 = vpop.permute.xlu2 %762 }
 0x4d4   :  { %v626_v51 = vsel %vm623_vm11, %v625_v24, %v621_v9  ;;  %v1023_v24 = vmov 32.0  }
 0x4d5   :  { %v627_v53 = vmul.f32 %v1212_v39, %v626_v51  ;;  %v767_v6 = vpop.permute.xlu1 %766  ;;  %898 = vrcp.f32 %v1023_v24 }
 0x4d7   :  { %v630_v55 = vpack.c.bf16 %v627_v53, %v612_v31  ;;  %v629_v56 = vadd.f32 %v627_v53, %v504_v54  ;;  %v399_v62 = vpop.f32.mrf.mxu2 }
 0x4d9   :  { %839 = vmatmul.msk.bf16.vlgmr.msrb.gmra.mxu1 %vm203_vm4, %v630_v55  ;;  %v733_v58 = vmul.f32 0.25, %v629_v56 }
 0x4db   :  { %v750_v28 = vrot.slane %v733_v58, 6  ;;  %v771_v50 = vpop.permute.xlu2 %770  ;;  %v899_v37 = vpop.eup %898 }
 0x4dc   :  { %v695_v9 = vmul.f32 32.0, %v899_v37 }
 0x4dd   :  { %777 = vrot.lane.b32.xlu2 %v750_v28, %s1022_s8  ;;  %v751_v59 = vsel %vm748_vm12, %v749_v42, %v750_v28  ;;  %v757_v4 = vmul.f32 %v750_v28, %v744_v48 }
 0x4de   :  { %775 = vrot.lane.b32.xlu1 %v751_v59, %s1022_s8  ;;  %v756_v8 = vmul.f32 %v751_v59, %v740_v7  ;;  %v696_v51 = vsub.f32 1.0, %v695_v9 }
 0x4df   :  { %v401_v63 = vpop.f32.mrf.mxu2 }
 0x4e0   :  { %v697_v53 = vmul.f32 %v899_v37, %v696_v51 }
 0x4e2   :  { %v698_v54 = vadd.f32 %v899_v37, %v697_v53 }
 0x537   :  { %v778_v39 = vpop.permute.xlu2 %777 }
 0x538   :  { %v784_v0 = vmul.f32 %v778_v39, %v771_v50 }
 0x53a   :  { %v787_v11 = vadd.f32 %v784_v0, %v757_v4 }
 0x53c   :  { %v794_v23 = vrot.slane %v787_v11, 2 }
 0x541   :  { %v774_v52 = vpop.permute.xlu0 %773 }
 0x542   :  { %v782_v1 = vmul.f32 %v774_v52, %v763_v60 }
 0x544   :  { %v785_v12 = vadd.f32 %v782_v1, %v755_v2 }
 0x546   :  { %v791_v26 = vrot.slane %v785_v12, 2 }
 0x550   :  { %v776_v5 = vpop.permute.xlu1 %775 }
 0x551   :  { %v783_v14 = vmul.f32 %v776_v5, %v767_v6 }
 0x553   :  { %v786_v17 = vadd.f32 %v783_v14, %v756_v8 }
 0x554   :  { %v521_v21 = vpop.f32.mrf.mxu2 }
 0x555   :  { %v792_v27 = vrot.slane %v786_v17, 2  ;;  %v424_v38 = vpop.f32.mrf.mxu3 }
 0x556   :  { %v646_v30 = vpop.f32.mrf.mxu1  ;;  %v425_v47 = vadd.f32 %v424_v38, %v399_v62 }
 0x557   :  { %v793_v31 = vsel %vm193_vm3, %v791_v26, %v792_v27  ;;  %v795_v32 = vsel %vm193_vm3, %v792_v27, %v794_v23  ;;  %vm687_vm3 = vcmask 261120  }
 0x558   :  { %796 = vrot.lane.b32.xlu2 %v793_v31, %s1018_s6 }
 0x55c   :  { %v523_v33 = vpop.f32.mrf.mxu2 }
 0x55d   :  { %v526_v35 = vpack.c.bf16 %v523_v33, %v521_v21  ;;  %v426_v20 = vpop.f32.mrf.mxu3 }
 0x55e   :  { %v648_v36 = vpop.f32.mrf.mxu1  ;;  %v427_v40 = vadd.f32 %v426_v20, %v401_v63  ;;  %v727_v63 = vperm.slane %v1081_v18, 1 }
 0x55f   :  { %v651_v3 = vpack.c.bf16 %v648_v36, %v646_v30  ;;  %837 = vmatmul.msk.bf16.vlgmr.msra.gmra.mxu3 %vm166_vm2, %v526_v35 }
 0x560   :  { %798 = vrot.lane.b32.xlu2 %v795_v32, %s1018_s6 }
 0x561   :  { %840 = vmatmul.msk.bf16.vlgmr.msrb.gmra.mxu2 %vm166_vm2, %v651_v3  ;;  %vm699_vm2 = vweird.f32 %v899_v37 }
 0x562   :  { %v700_v55 = vsel %vm699_vm2, %v899_v37, %v698_v54 }
 0x5b2   :  { %v797_v8 = vpop.permute.xlu2 %796 }
 0x5e2   :  { %v547_v34 = vpop.f32.mrf.mxu3 }
 0x5e3   :  { %v552_v29 = vadd.f32 %v547_v34, %v425_v47 }
 0x5e4   :  { %v672_v57 = vpop.f32.mrf.mxu2 }
 0x5e5   :  { %v677_v19 = vadd.f32 %v672_v57, %v552_v29 }
 0x5e7   :  { %v683_v25 = vadd.f32 %v681_v61, %v677_v19 }
 0x5e9   :  { %v685_v41 = vmul.f32 %v683_v25, %v683_v25 }
 0x5ea   :  { %v549_v10 = vpop.f32.mrf.mxu3 }
 0x5eb   :  { %v553_v42 = vadd.f32 %v549_v10, %v427_v40  ;;  %v688_v43 = vsel %vm687_vm3, %v685_v41, 0.0 }
 0x5ec   :  { %v674_v44 = vpop.f32.mrf.mxu2  ;;  %689 = vadd.xlane.f32.xlu0 %v688_v43 }
 0x5ed   :  { %v678_v45 = vadd.f32 %v674_v44, %v553_v42 }
 0x5ef   :  { %v684_v49 = vadd.f32 %v681_v61, %v678_v45 }
 0x5f1   :  { %v686_v13 = vmul.f32 %v684_v49, %v684_v49 }
 0x5f3   :  { %v691_v22 = vsel %vm687_vm3, %v686_v13, 0.0 }
 0x5f4   :  { %692 = vadd.xlane.f32.xlu1 %v691_v22 }
 0x65f   :  { %v690_v56 = vpop.xlane.xlu0 %689 }
 0x660   :  { %v701_v58 = vmul.f32 %v700_v55, %v690_v56 }
 0x662   :  { %v703_v28 = vadd.f32 1e-06, %v701_v58 }
 0x664   :  { %900 = vrsqrt.f32 %v703_v28  ;;  %vm711_vm13 = vweird.f32 %v703_v28 }
 0x667   :  { %v693_v59 = vpop.xlane.xlu1 %692 }
 0x668   :  { %v702_v46 = vmul.f32 %v700_v55, %v693_v59 }
 0x66a   :  { %v901_v60 = vpop.eup %900  ;;  %v704_v61 = vadd.f32 1e-06, %v702_v46 }
 0x66b   :  { %v706_v48 = vmul.f32 %v901_v60, %v703_v28  ;;  %vm712_vm4 = vweird.f32 %v901_v60 }
 0x66c   :  { %902 = vrsqrt.f32 %v704_v61  ;;  %vm713_vm14 = vmor %vm711_vm13, %vm712_vm4  ;;  %vm721_vm5 = vweird.f32 %v704_v61 }
 0x66d   :  { %v707_v50 = vmul.f32 %v901_v60, %v706_v48 }
 0x66f   :  { %v708_v62 = vmul.f32 0.5, %v707_v50 }
 0x671   :  { %v709_v7 = vsub.f32 1.5, %v708_v62 }
 0x672   :  { %v903_v6 = vpop.eup %902 }
 0x673   :  { %v710_v39 = vmul.f32 %v901_v60, %v709_v7  ;;  %v716_v52 = vmul.f32 %v903_v6, %v704_v61  ;;  %vm722_vm15 = vweird.f32 %v903_v6 }
 0x674   :  { %vm723_vm6 = vmor %vm721_vm5, %vm722_vm15 }
 0x675   :  { %v714_v0 = vsel %vm713_vm14, %v901_v60, %v710_v39  ;;  %v717_v1 = vmul.f32 %v903_v6, %v716_v52 }
 0x676   :  { %v725_v2 = vmul.f32 %v714_v0, %v683_v25 }
 0x677   :  { %v718_v4 = vmul.f32 0.5, %v717_v1 }
 0x678   :  { %v728_v5 = vmul.f32 %v727_v63, %v725_v2 }
 0x679   :  { %v719_v11 = vsub.f32 1.5, %v718_v4 }
 0x67a   :  { %v730_v12 = vadd.f32 %v728_v5, %v1075_v15  ;;  %v799_v15 = vpop.permute.xlu2 %798 }
 0x67b   :  { %v720_v14 = vmul.f32 %v903_v6, %v719_v11 }
 0x67c   :  { %v802_v17 = vsel %vm687_vm3, %v730_v12, %v797_v8 }
 0x67d   :  { %v724_v21 = vsel %vm723_vm6, %v903_v6, %v720_v14  ;;  %805 = vst.msk [vmem:[#allocation8] sm:$0xff] %vm804_vm0, %v802_v17 }
 0x67e   :  { %v726_v18 = vmul.f32 %v724_v21, %v684_v49 }
 0x680   :  { %v729_v23 = vmul.f32 %v727_v63, %v726_v18 }
 0x682   :  { %v731_v26 = vadd.f32 %v729_v23, %v1077_v16 }
 0x684   :  { %v803_v27 = vsel %vm687_vm3, %v731_v26, %v799_v15 }
 0x685   :  { %806 = vst.msk [vmem:[#allocation8 + $0x8] sm:$0xff] %vm804_vm0, %v803_v27 }
 0x686   :  { %819 = dma.vmem_to_hbm [thread:$0]  %s812_s10, 256, %s814_s13, [#allocation4], %s1007_s20, %s1007_s20, %s1008_s21  }
 0x687   :  { %1004 = dma.done.wait [#allocation4], 256  }
 0x688   :  { %1005 = vsyncadd [#allocation4], 4294967040 }
 0x689   :  { %824 = vsyncpa [#allocation3], 1 }
 0x68a   :  { %825 = vsyncpa [#allocation6], 1 }
 0x68b   :  { %826 = vsyncpa [#allocation4], 1 }

</bundles_post_ra>
